<compile_context>
chip_gen: v7x
topology: tpu7x:2x2x1
jax: 0.10.0
libtpu: 0.0.40
codegen_flags: <defaults>
</compile_context>

<pallas_src>
import jax
import jax.numpy as jnp
from jax.experimental import pallas as pl
from jax.experimental.pallas import tpu as pltpu

# ---------------- problem sizes (small, deterministic) ----------------
N, C_IN, H, W = 2, 8, 16, 16
HW = H * W                  # 256 -> lane axis (multiple of 128, fully dense)
C = 32                      # out channels of wrapped `net` (= SE gate width)
REDUCTION = 16
HID = C // REDUCTION        # 2


# ---------------------------- Pallas kernel ----------------------------
def se_kernel(x_ref, wnet_ref, bnet_ref, w1t_ref, w2_ref, out_ref):
    # x_ref   : (N, C_IN, HW)
    # wnet_ref: (C, C_IN)   -- 1x1 conv weight
    # bnet_ref: (C, 1)      -- 1x1 conv bias
    # w1t_ref : (C, HID)    -- fc1 weight, transposed
    # w2_ref  : (C, HID)    -- fc2 weight
    # out_ref : (N, C, HW)
    wnet = wnet_ref[...]
    bnet = bnet_ref[...]
    w1t = w1t_ref[...]
    w2 = w2_ref[...]

    for n in range(N):                       # static unroll over the 2 batch elements
        x_n = x_ref[n]                       # (C_IN, HW)

        # ---- wrapped net: 1x1 conv == C_IN unrolled VPU FMAs (exact f32, no MXU) ----
        y = wnet[:, 0:1] * x_n[0:1, :] + bnet            # (C, HW)
        for i in range(1, C_IN):
            y = y + wnet[:, i:i + 1] * x_n[i:i + 1, :]

        # ---- squeeze: global average pool over HW (lane reduce) ----
        s = jnp.mean(y, axis=1, keepdims=True)           # (C, 1)

        # ---- excitation: fc1 -> ReLU -> fc2 -> sigmoid (column-oriented, no transposes)
        h = jnp.maximum(jnp.sum(w1t * s, axis=0, keepdims=True), 0.0)   # (1, HID)
        att = jax.nn.sigmoid(jnp.sum(w2 * h, axis=1, keepdims=True))    # (C, 1)

        # ---- scale (lane-dense store, last dim = 256) ----
        out_ref[n] = (y * att).astype(out_ref.dtype)


@jax.jit
def se_pallas(x_flat, wnet, bnet, w1t, w2):
    vmem = lambda: pl.BlockSpec(memory_space=pltpu.MemorySpace.VMEM)
    return pl.pallas_call(
        se_kernel,
        out_shape=jax.ShapeDtypeStruct((N, C, HW), jnp.float32),
        in_specs=[vmem(), vmem(), vmem(), vmem(), vmem()],
        out_specs=vmem(),
    )(x_flat, wnet, bnet, w1t, w2)


# ------------------------------ host glue ------------------------------
def se_forward(x_nchw, p):
    n, cin, h, w = x_nchw.shape
    x_flat = x_nchw.reshape(n, cin, h * w)           # free reshape (channel-major kept)
    out_flat = se_pallas(
        x_flat,
        p["w_net"].reshape(C, C_IN),                 # (C, C_IN)
        p["b_net"].reshape(C, 1),                    # (C, 1)
        p["w1"].T,                                   # (C, HID)
        p["w2"],                                     # (C, HID)
    )
    return out_flat.reshape(n, C, h, w)              # free reshape back to NCHW


def se_reference(x_nchw, p):
    hp = jax.lax.Precision.HIGHEST
    y = jnp.einsum("nihw,oi->nohw", x_nchw, p["w_net"].reshape(C, C_IN),
                   precision=hp) + p["b_net"][None, :, None, None]
    s = jnp.mean(y, axis=(2, 3))
    h = jnp.maximum(jnp.dot(s, p["w1"].T, precision=hp), 0.0)
    att = jax.nn.sigmoid(jnp.dot(h, p["w2"].T, precision=hp))
    return y * att[:, :, None, None]


def init_params(key):
    ks = jax.random.split(key, 4)
    return {
        "w_net": 0.3 * jax.random.normal(ks[0], (C, C_IN, 1, 1), jnp.float32),
        "b_net": 0.1 * jax.random.normal(ks[1], (C,), jnp.float32),
        "w1": 0.3 * jax.random.normal(ks[2], (HID, C), jnp.float32),
        "w2": 0.3 * jax.random.normal(ks[3], (C, HID), jnp.float32),
    }


if __name__ == "__main__":
    key = jax.random.PRNGKey(0)
    kx, kp = jax.random.split(key)
    x = jax.random.normal(kx, (N, C_IN, H, W), jnp.float32)
    params = init_params(kp)

    out = jax.block_until_ready(se_forward(x, params))
    assert out.shape == (N, C, H, W), out.shape

    ref = se_reference(x, params)
    if not jnp.allclose(out, ref, atol=3e-4, rtol=3e-4):
        raise AssertionError(
            f"mismatch: max abs err = {float(jnp.max(jnp.abs(out - ref)))}")
    print("KERNEL_OK")
</pallas_src>

<mosaic_0001>
module attributes {stable_mosaic.version = 11 : i64} {
  func.func @se_kernel(%arg0: memref<2x8x256xf32, #tpu.memory_space<vmem>>, %arg1: memref<32x8xf32, #tpu.memory_space<vmem>>, %arg2: memref<32x1xf32, #tpu.memory_space<vmem>>, %arg3: memref<32x2xf32, #tpu.memory_space<vmem>>, %arg4: memref<32x2xf32, #tpu.memory_space<vmem>>, %arg5: memref<2x32x256xf32, #tpu.memory_space<vmem>>) attributes {dimension_semantics = [], scalar_prefetch = 0 : i64, scratch_operands = 0 : i64, tpu.core_type = #tpu.core_type<tc>} {
    %c0 = arith.constant 0 : index
    %c0_0 = arith.constant 0 : index
    %0 = vector.load %arg1[%c0, %c0_0] : memref<32x8xf32, #tpu.memory_space<vmem>>, vector<32x8xf32>
    %c0_1 = arith.constant 0 : index
    %c0_2 = arith.constant 0 : index
    %1 = vector.load %arg2[%c0_1, %c0_2] : memref<32x1xf32, #tpu.memory_space<vmem>>, vector<32x1xf32>
    %c0_3 = arith.constant 0 : index
    %c0_4 = arith.constant 0 : index
    %2 = vector.load %arg3[%c0_3, %c0_4] : memref<32x2xf32, #tpu.memory_space<vmem>>, vector<32x2xf32>
    %c0_5 = arith.constant 0 : index
    %c0_6 = arith.constant 0 : index
    %3 = vector.load %arg4[%c0_5, %c0_6] : memref<32x2xf32, #tpu.memory_space<vmem>>, vector<32x2xf32>
    %c0_7 = arith.constant 0 : index
    %c0_8 = arith.constant 0 : index
    %c0_9 = arith.constant 0 : index
    %4 = vector.load %arg0[%c0_7, %c0_8, %c0_9] : memref<2x8x256xf32, #tpu.memory_space<vmem>>, vector<1x8x256xf32>
    %5 = vector.shape_cast %4 : vector<1x8x256xf32> to vector<8x256xf32>
    %6 = vector.extract_strided_slice %0 {offsets = [0, 0], sizes = [32, 1], strides = [1, 1]} : vector<32x8xf32> to vector<32x1xf32>
    %7 = vector.extract_strided_slice %5 {offsets = [0, 0], sizes = [1, 256], strides = [1, 1]} : vector<8x256xf32> to vector<1x256xf32>
    %8 = vector.broadcast %6 : vector<32x1xf32> to vector<32x256xf32>
    %9 = vector.broadcast %7 : vector<1x256xf32> to vector<32x256xf32>
    %10 = arith.mulf %8, %9 : vector<32x256xf32>
    %11 = vector.broadcast %1 : vector<32x1xf32> to vector<32x256xf32>
    %12 = arith.addf %10, %11 : vector<32x256xf32>
    %13 = vector.extract_strided_slice %0 {offsets = [0, 1], sizes = [32, 1], strides = [1, 1]} : vector<32x8xf32> to vector<32x1xf32>
    %14 = vector.extract_strided_slice %5 {offsets = [1, 0], sizes = [1, 256], strides = [1, 1]} : vector<8x256xf32> to vector<1x256xf32>
    %15 = vector.broadcast %13 : vector<32x1xf32> to vector<32x256xf32>
    %16 = vector.broadcast %14 : vector<1x256xf32> to vector<32x256xf32>
    %17 = arith.mulf %15, %16 : vector<32x256xf32>
    %18 = arith.addf %12, %17 : vector<32x256xf32>
    %19 = vector.extract_strided_slice %0 {offsets = [0, 2], sizes = [32, 1], strides = [1, 1]} : vector<32x8xf32> to vector<32x1xf32>
    %20 = vector.extract_strided_slice %5 {offsets = [2, 0], sizes = [1, 256], strides = [1, 1]} : vector<8x256xf32> to vector<1x256xf32>
    %21 = vector.broadcast %19 : vector<32x1xf32> to vector<32x256xf32>
    %22 = vector.broadcast %20 : vector<1x256xf32> to vector<32x256xf32>
    %23 = arith.mulf %21, %22 : vector<32x256xf32>
    %24 = arith.addf %18, %23 : vector<32x256xf32>
    %25 = vector.extract_strided_slice %0 {offsets = [0, 3], sizes = [32, 1], strides = [1, 1]} : vector<32x8xf32> to vector<32x1xf32>
    %26 = vector.extract_strided_slice %5 {offsets = [3, 0], sizes = [1, 256], strides = [1, 1]} : vector<8x256xf32> to vector<1x256xf32>
    %27 = vector.broadcast %25 : vector<32x1xf32> to vector<32x256xf32>
    %28 = vector.broadcast %26 : vector<1x256xf32> to vector<32x256xf32>
    %29 = arith.mulf %27, %28 : vector<32x256xf32>
    %30 = arith.addf %24, %29 : vector<32x256xf32>
    %31 = vector.extract_strided_slice %0 {offsets = [0, 4], sizes = [32, 1], strides = [1, 1]} : vector<32x8xf32> to vector<32x1xf32>
    %32 = vector.extract_strided_slice %5 {offsets = [4, 0], sizes = [1, 256], strides = [1, 1]} : vector<8x256xf32> to vector<1x256xf32>
    %33 = vector.broadcast %31 : vector<32x1xf32> to vector<32x256xf32>
    %34 = vector.broadcast %32 : vector<1x256xf32> to vector<32x256xf32>
    %35 = arith.mulf %33, %34 : vector<32x256xf32>
    %36 = arith.addf %30, %35 : vector<32x256xf32>
    %37 = vector.extract_strided_slice %0 {offsets = [0, 5], sizes = [32, 1], strides = [1, 1]} : vector<32x8xf32> to vector<32x1xf32>
    %38 = vector.extract_strided_slice %5 {offsets = [5, 0], sizes = [1, 256], strides = [1, 1]} : vector<8x256xf32> to vector<1x256xf32>
    %39 = vector.broadcast %37 : vector<32x1xf32> to vector<32x256xf32>
    %40 = vector.broadcast %38 : vector<1x256xf32> to vector<32x256xf32>
    %41 = arith.mulf %39, %40 : vector<32x256xf32>
    %42 = arith.addf %36, %41 : vector<32x256xf32>
    %43 = vector.extract_strided_slice %0 {offsets = [0, 6], sizes = [32, 1], strides = [1, 1]} : vector<32x8xf32> to vector<32x1xf32>
    %44 = vector.extract_strided_slice %5 {offsets = [6, 0], sizes = [1, 256], strides = [1, 1]} : vector<8x256xf32> to vector<1x256xf32>
    %45 = vector.broadcast %43 : vector<32x1xf32> to vector<32x256xf32>
    %46 = vector.broadcast %44 : vector<1x256xf32> to vector<32x256xf32>
    %47 = arith.mulf %45, %46 : vector<32x256xf32>
    %48 = arith.addf %42, %47 : vector<32x256xf32>
    %49 = vector.extract_strided_slice %0 {offsets = [0, 7], sizes = [32, 1], strides = [1, 1]} : vector<32x8xf32> to vector<32x1xf32>
    %50 = vector.extract_strided_slice %5 {offsets = [7, 0], sizes = [1, 256], strides = [1, 1]} : vector<8x256xf32> to vector<1x256xf32>
    %51 = vector.broadcast %49 : vector<32x1xf32> to vector<32x256xf32>
    %52 = vector.broadcast %50 : vector<1x256xf32> to vector<32x256xf32>
    %53 = arith.mulf %51, %52 : vector<32x256xf32>
    %54 = arith.addf %48, %53 : vector<32x256xf32>
    %cst = arith.constant dense<0.000000e+00> : vector<32xf32>
    %55 = vector.multi_reduction <add>, %54, %cst [1] : vector<32x256xf32> to vector<32xf32>
    %56 = vector.shape_cast %55 : vector<32xf32> to vector<32x1xf32>
    %cst_10 = arith.constant 2.560000e+02 : f32
    %57 = vector.broadcast %cst_10 : f32 to vector<32x1xf32>
    %58 = arith.divf %56, %57 : vector<32x1xf32>
    %59 = vector.broadcast %58 : vector<32x1xf32> to vector<32x2xf32>
    %60 = arith.mulf %2, %59 : vector<32x2xf32>
    %cst_11 = arith.constant dense<0.000000e+00> : vector<2xf32>
    %61 = vector.multi_reduction <add>, %60, %cst_11 [0] : vector<32x2xf32> to vector<2xf32>
    %62 = vector.shape_cast %61 : vector<2xf32> to vector<1x2xf32>
    %cst_12 = arith.constant 0.000000e+00 : f32
    %63 = vector.broadcast %cst_12 : f32 to vector<1x2xf32>
    %64 = arith.maximumf %62, %63 : vector<1x2xf32>
    %65 = vector.broadcast %64 : vector<1x2xf32> to vector<32x2xf32>
    %66 = arith.mulf %3, %65 : vector<32x2xf32>
    %cst_13 = arith.constant dense<0.000000e+00> : vector<32xf32>
    %67 = vector.multi_reduction <add>, %66, %cst_13 [1] : vector<32x2xf32> to vector<32xf32>
    %68 = vector.shape_cast %67 : vector<32xf32> to vector<32x1xf32>
    %69 = arith.negf %68 : vector<32x1xf32>
    %70 = math.exp %69 : vector<32x1xf32>
    %cst_14 = arith.constant 1.000000e+00 : f32
    %71 = vector.broadcast %cst_14 : f32 to vector<32x1xf32>
    %72 = arith.addf %71, %70 : vector<32x1xf32>
    %73 = arith.divf %71, %72 : vector<32x1xf32>
    %74 = vector.broadcast %73 : vector<32x1xf32> to vector<32x256xf32>
    %75 = arith.mulf %54, %74 : vector<32x256xf32>
    %c0_15 = arith.constant 0 : index
    %c0_16 = arith.constant 0 : index
    %c0_17 = arith.constant 0 : index
    %76 = vector.load %arg5[%c0_15, %c0_16, %c0_17] : memref<2x32x256xf32, #tpu.memory_space<vmem>>, vector<1x32x256xf32>
    %77 = vector.shape_cast %76 : vector<1x32x256xf32> to vector<32x256xf32>
    %78 = vector.shape_cast %75 : vector<32x256xf32> to vector<1x32x256xf32>
    tpu.vector_store %arg5[%c0_15, %c0_16, %c0_17], %78 {strides = array<i32>} : memref<2x32x256xf32, #tpu.memory_space<vmem>>, vector<1x32x256xf32>,
    %c1 = arith.constant 1 : index
    %c0_18 = arith.constant 0 : index
    %c0_19 = arith.constant 0 : index
    %79 = vector.load %arg0[%c1, %c0_18, %c0_19] : memref<2x8x256xf32, #tpu.memory_space<vmem>>, vector<1x8x256xf32>
    %80 = vector.shape_cast %79 : vector<1x8x256xf32> to vector<8x256xf32>
    %81 = vector.extract_strided_slice %0 {offsets = [0, 0], sizes = [32, 1], strides = [1, 1]} : vector<32x8xf32> to vector<32x1xf32>
    %82 = vector.extract_strided_slice %80 {offsets = [0, 0], sizes = [1, 256], strides = [1, 1]} : vector<8x256xf32> to vector<1x256xf32>
    %83 = vector.broadcast %81 : vector<32x1xf32> to vector<32x256xf32>
    %84 = vector.broadcast %82 : vector<1x256xf32> to vector<32x256xf32>
    %85 = arith.mulf %83, %84 : vector<32x256xf32>
    %86 = vector.broadcast %1 : vector<32x1xf32> to vector<32x256xf32>
    %87 = arith.addf %85, %86 : vector<32x256xf32>
    %88 = vector.extract_strided_slice %0 {offsets = [0, 1], sizes = [32, 1], strides = [1, 1]} : vector<32x8xf32> to vector<32x1xf32>
    %89 = vector.extract_strided_slice %80 {offsets = [1, 0], sizes = [1, 256], strides = [1, 1]} : vector<8x256xf32> to vector<1x256xf32>
    %90 = vector.broadcast %88 : vector<32x1xf32> to vector<32x256xf32>
    %91 = vector.broadcast %89 : vector<1x256xf32> to vector<32x256xf32>
    %92 = arith.mulf %90, %91 : vector<32x256xf32>
    %93 = arith.addf %87, %92 : vector<32x256xf32>
    %94 = vector.extract_strided_slice %0 {offsets = [0, 2], sizes = [32, 1], strides = [1, 1]} : vector<32x8xf32> to vector<32x1xf32>
    %95 = vector.extract_strided_slice %80 {offsets = [2, 0], sizes = [1, 256], strides = [1, 1]} : vector<8x256xf32> to vector<1x256xf32>
    %96 = vector.broadcast %94 : vector<32x1xf32> to vector<32x256xf32>
    %97 = vector.broadcast %95 : vector<1x256xf32> to vector<32x256xf32>
    %98 = arith.mulf %96, %97 : vector<32x256xf32>
    %99 = arith.addf %93, %98 : vector<32x256xf32>
    %100 = vector.extract_strided_slice %0 {offsets = [0, 3], sizes = [32, 1], strides = [1, 1]} : vector<32x8xf32> to vector<32x1xf32>
    %101 = vector.extract_strided_slice %80 {offsets = [3, 0], sizes = [1, 256], strides = [1, 1]} : vector<8x256xf32> to vector<1x256xf32>
    %102 = vector.broadcast %100 : vector<32x1xf32> to vector<32x256xf32>
    %103 = vector.broadcast %101 : vector<1x256xf32> to vector<32x256xf32>
    %104 = arith.mulf %102, %103 : vector<32x256xf32>
    %105 = arith.addf %99, %104 : vector<32x256xf32>
    %106 = vector.extract_strided_slice %0 {offsets = [0, 4], sizes = [32, 1], strides = [1, 1]} : vector<32x8xf32> to vector<32x1xf32>
    %107 = vector.extract_strided_slice %80 {offsets = [4, 0], sizes = [1, 256], strides = [1, 1]} : vector<8x256xf32> to vector<1x256xf32>
    %108 = vector.broadcast %106 : vector<32x1xf32> to vector<32x256xf32>
    %109 = vector.broadcast %107 : vector<1x256xf32> to vector<32x256xf32>
    %110 = arith.mulf %108, %109 : vector<32x256xf32>
    %111 = arith.addf %105, %110 : vector<32x256xf32>
    %112 = vector.extract_strided_slice %0 {offsets = [0, 5], sizes = [32, 1], strides = [1, 1]} : vector<32x8xf32> to vector<32x1xf32>
    %113 = vector.extract_strided_slice %80 {offsets = [5, 0], sizes = [1, 256], strides = [1, 1]} : vector<8x256xf32> to vector<1x256xf32>
    %114 = vector.broadcast %112 : vector<32x1xf32> to vector<32x256xf32>
    %115 = vector.broadcast %113 : vector<1x256xf32> to vector<32x256xf32>
    %116 = arith.mulf %114, %115 : vector<32x256xf32>
    %117 = arith.addf %111, %116 : vector<32x256xf32>
    %118 = vector.extract_strided_slice %0 {offsets = [0, 6], sizes = [32, 1], strides = [1, 1]} : vector<32x8xf32> to vector<32x1xf32>
    %119 = vector.extract_strided_slice %80 {offsets = [6, 0], sizes = [1, 256], strides = [1, 1]} : vector<8x256xf32> to vector<1x256xf32>
    %120 = vector.broadcast %118 : vector<32x1xf32> to vector<32x256xf32>
    %121 = vector.broadcast %119 : vector<1x256xf32> to vector<32x256xf32>
    %122 = arith.mulf %120, %121 : vector<32x256xf32>
    %123 = arith.addf %117, %122 : vector<32x256xf32>
    %124 = vector.extract_strided_slice %0 {offsets = [0, 7], sizes = [32, 1], strides = [1, 1]} : vector<32x8xf32> to vector<32x1xf32>
    %125 = vector.extract_strided_slice %80 {offsets = [7, 0], sizes = [1, 256], strides = [1, 1]} : vector<8x256xf32> to vector<1x256xf32>
    %126 = vector.broadcast %124 : vector<32x1xf32> to vector<32x256xf32>
    %127 = vector.broadcast %125 : vector<1x256xf32> to vector<32x256xf32>
    %128 = arith.mulf %126, %127 : vector<32x256xf32>
    %129 = arith.addf %123, %128 : vector<32x256xf32>
    %cst_20 = arith.constant dense<0.000000e+00> : vector<32xf32>
    %130 = vector.multi_reduction <add>, %129, %cst_20 [1] : vector<32x256xf32> to vector<32xf32>
    %131 = vector.shape_cast %130 : vector<32xf32> to vector<32x1xf32>
    %cst_21 = arith.constant 2.560000e+02 : f32
    %132 = vector.broadcast %cst_21 : f32 to vector<32x1xf32>
    %133 = arith.divf %131, %132 : vector<32x1xf32>
    %134 = vector.broadcast %133 : vector<32x1xf32> to vector<32x2xf32>
    %135 = arith.mulf %2, %134 : vector<32x2xf32>
    %cst_22 = arith.constant dense<0.000000e+00> : vector<2xf32>
    %136 = vector.multi_reduction <add>, %135, %cst_22 [0] : vector<32x2xf32> to vector<2xf32>
    %137 = vector.shape_cast %136 : vector<2xf32> to vector<1x2xf32>
    %cst_23 = arith.constant 0.000000e+00 : f32
    %138 = vector.broadcast %cst_23 : f32 to vector<1x2xf32>
    %139 = arith.maximumf %137, %138 : vector<1x2xf32>
    %140 = vector.broadcast %139 : vector<1x2xf32> to vector<32x2xf32>
    %141 = arith.mulf %3, %140 : vector<32x2xf32>
    %cst_24 = arith.constant dense<0.000000e+00> : vector<32xf32>
    %142 = vector.multi_reduction <add>, %141, %cst_24 [1] : vector<32x2xf32> to vector<32xf32>
    %143 = vector.shape_cast %142 : vector<32xf32> to vector<32x1xf32>
    %144 = arith.negf %143 : vector<32x1xf32>
    %145 = math.exp %144 : vector<32x1xf32>
    %cst_25 = arith.constant 1.000000e+00 : f32
    %146 = vector.broadcast %cst_25 : f32 to vector<32x1xf32>
    %147 = arith.addf %146, %145 : vector<32x1xf32>
    %148 = arith.divf %146, %147 : vector<32x1xf32>
    %149 = vector.broadcast %148 : vector<32x1xf32> to vector<32x256xf32>
    %150 = arith.mulf %129, %149 : vector<32x256xf32>
    %c1_26 = arith.constant 1 : index
    %c0_27 = arith.constant 0 : index
    %c0_28 = arith.constant 0 : index
    %151 = vector.load %arg5[%c1_26, %c0_27, %c0_28] : memref<2x32x256xf32, #tpu.memory_space<vmem>>, vector<1x32x256xf32>
    %152 = vector.shape_cast %151 : vector<1x32x256xf32> to vector<32x256xf32>
    %153 = vector.shape_cast %150 : vector<32x256xf32> to vector<1x32x256xf32>
    tpu.vector_store %arg5[%c1_26, %c0_27, %c0_28], %153 {strides = array<i32>} : memref<2x32x256xf32, #tpu.memory_space<vmem>>, vector<1x32x256xf32>,
    return
  }
}

</mosaic_0001>

<bundles_post_ra>
// kernel: se_pallas.1
= control target key start
LH: loop header
LB: loop body
LE: loop exit
PB: predicated region body
PF: predicated region fallthrough
CT: control target
= control target key end

     0   :  { %v881_v2 = vmov 0   ;;  %s1457_s0 = inlined_call_operand.vmem [shape: f32[2,8,256], index: 0, kind: input, shape index: {}]   ;;  %s1458_s1 = inlined_call_operand.vmem [shape: f32[32,8], index: 1, kind: input, shape index: {}]   ;;  %s1459_s2 = inlined_call_operand.vmem [shape: f32[32,1], index: 2, kind: input, shape index: {}]   ;;  %s1460_s3 = inlined_call_operand.vmem [shape: f32[32,2], index: 3, kind: input, shape index: {}]   ;;  %s1461_s4 = inlined_call_operand.vmem [shape: f32[32,2], index: 4, kind: input, shape index: {}]   ;;  %s1462_s5 = inlined_call_operand.hbm [shape: f32[2,32,256], index: 5, kind: output, shape index: {}]  }
   0x1   :  { %v925_v0 = vld [vmem:[%s1458_s1 + $0x10] sm:$0xff]  ;;  %v930_v1 = vld [vmem:[%s1458_s1] sm:$0xff]  ;;  %799 = vset.pattern.permute.xlu1 %v881_v2  ;;  %798 = vset.pattern.permute.xlu0 %v881_v2  ;;  %v22_v4 = vld [vmem:[%s1458_s1 + $0x8] sm:$0xff] }
   0x2   :  { %51 = vperm.xlu1 %799, %v925_v0   ;;  %41 = vperm.xlu0 %798, %v930_v1   ;;  %v25_v3 = vld [vmem:[%s1459_s2] sm:$0xff] }
   0x3   :  { %10 = vsyncpa [#allocation3], 0  ;;  %v26_v5 = vld [vmem:[%s1459_s2 + $0x8] sm:$0xff]  ;;  %v882_v6 = vmov 1   ;;  %v24_v7 = vld [vmem:[%s1458_s1 + $0x18] sm:$0xff]  ;;  %v883_v9 = vmov 2   ;;  %v59_v22 = vlaneseq }
   0x4   :  { %v27_v8 = vld [vmem:[%s1459_s2 + $0x10] sm:$0xff]  ;;  %v28_v10 = vld [vmem:[%s1459_s2 + $0x18] sm:$0xff]  ;;  %v884_v11 = vmov 3   ;;  %v885_v12 = vmov 4   ;;  %v886_v13 = vmov 5   ;;  %v887_v14 = vmov 6  }
   0x5   :  { %v888_v15 = vmov 7   ;;  %v60_v25 = vshrl.u32 %v59_v22, 7  ;;  %v37_v29 = vld [vmem:[%s1457_s0] sm:$0xff]  ;;  %v38_v30 = vld [vmem:[%s1457_s0 + $0x8] sm:$0xff]  ;;  %v781_v31 = vld [vmem:[%s1457_s0 + $0x10] sm:$0xff]  ;;  %vm404_vm0 = vcmask 15360  }
   0x6   :  { %77 = vperm.xlu1 %799, %v25_v3   ;;  %46 = vperm.xlu0 %798, %v22_v4   ;;  %v782_v33 = vld [vmem:[%s1457_s0 + $0x18] sm:$0xff] }
   0x7   :  { %v61_v27 = vsub.s32 0, %v60_v25  ;;  %v121_v32 = vsub.s32 1, %v60_v25  ;;  %v161_v34 = vsub.s32 2, %v60_v25  ;;  %v201_v39 = vsub.s32 3, %v60_v25 }
   0x8   :  { %v241_v43 = vsub.s32 4, %v60_v25  ;;  %v281_v48 = vsub.s32 5, %v60_v25  ;;  %v321_v52 = vsub.s32 6, %v60_v25  ;;  %v361_v56 = vsub.s32 7, %v60_v25 }
   0x9   :  { %v998_v35 = vrot.slane %v37_v29, %v61_v27  ;;  %v1000_v36 = vrot.slane %v38_v30, %v61_v27  ;;  %v1002_v37 = vrot.slane %v781_v31, %v61_v27  ;;  %v1006_v40 = vrot.slane %v782_v33, %v61_v27 }
   0xa   :  { %800 = vset.pattern.permute.xlu1 %v882_v6  ;;  %82 = vperm.xlu0 %798, %v26_v5   ;;  %v1008_v41 = vrot.slane %v37_v29, %v121_v32  ;;  %v1010_v42 = vrot.slane %v38_v30, %v121_v32  ;;  %v1012_v44 = vrot.slane %v781_v31, %v121_v32 }
   0xb   :  { %104 = vperm.xlu1 %800, %v930_v1   ;;  %v1014_v45 = vrot.slane %v782_v33, %v121_v32  ;;  %v1018_v47 = vrot.slane %v37_v29, %v161_v34  ;;  %v1020_v49 = vrot.slane %v38_v30, %v161_v34  ;;  %v1022_v50 = vrot.slane %v781_v31, %v161_v34 }
   0xc   :  { %v1024_v51 = vrot.slane %v782_v33, %v161_v34  ;;  %v1026_v53 = vrot.slane %v37_v29, %v201_v39  ;;  %v1028_v54 = vrot.slane %v38_v30, %v201_v39  ;;  %v1030_v55 = vrot.slane %v781_v31, %v201_v39 }
   0xd   :  { %1483 = vst [vmem:[#allocation5_spill] sm:$0xff] %v1018_v47  ;;  %1484 = vst [vmem:[#allocation6_spill] sm:$0xff] %v1020_v49  ;;  %v1034_v58 = vrot.slane %v782_v33, %v201_v39  ;;  %v1036_v59 = vrot.slane %v37_v29, %v241_v43  ;;  %v1038_v60 = vrot.slane %v38_v30, %v241_v43 }
   0xe   :  { %801 = vset.pattern.permute.xlu0 %v882_v6  ;;  %1485 = vst [vmem:[#allocation7_spill] sm:$0xff] %v1022_v50  ;;  %v1040_v61 = vrot.slane %v781_v31, %v241_v43  ;;  %v1042_v62 = vrot.slane %v782_v33, %v241_v43  ;;  %v1044_v63 = vrot.slane %v37_v29, %v281_v48 }
   0xf   :  { %802 = vset.pattern.permute.xlu1 %v881_v2  ;;  %108 = vperm.xlu0 %801, %v22_v4   ;;  %v1052_v3 = vrot.slane %v782_v33, %v281_v48  ;;  %v1056_v5 = vrot.slane %v38_v30, %v321_v52  ;;  %v1080_v27 = vrot.slane %v781_v31, %v361_v56 }
  0x10   :  { %56 = vperm.xlu1 %802, %v24_v7   ;;  %1486 = vst [vmem:[#allocation8_spill] sm:$0xff] %v1040_v61  ;;  %1487 = vst [vmem:[#allocation9_spill] sm:$0xff] %v1042_v62 }
  0x11   :  { %1488 = vst [vmem:[#allocation10_spill] sm:$0xff] %v1044_v63  ;;  %1491 = vst [vmem:[#allocation13_spill] sm:$0xff] %v1052_v3 }
  0x12   :  { %1493 = vst [vmem:[#allocation15_spill] sm:$0xff] %v1056_v5  ;;  %1498 = vst [vmem:[#allocation20_spill] sm:$0xff] %v1080_v27 }
  0x13   :  { %112 = vperm.xlu0 %801, %v925_v0  }
  0x14   :  { %87 = vperm.xlu1 %802, %v27_v8   ;;  %v1060_v8 = vrot.slane %v781_v31, %v321_v52 }
  0x16   :  { %1494 = vst [vmem:[#allocation16_spill] sm:$0xff] %v1060_v8 }
  0x17   :  { %804 = vset.pattern.permute.xlu0 %v883_v9 }
  0x18   :  { %803 = vset.pattern.permute.xlu1 %v883_v9  ;;  %148 = vperm.xlu0 %804, %v22_v4  }
  0x19   :  { %144 = vperm.xlu1 %803, %v930_v1  }
  0x1c   :  { %152 = vperm.xlu0 %804, %v925_v0  }
  0x1d   :  { %805 = vset.pattern.permute.xlu1 %v881_v2 }
  0x1e   :  { %92 = vperm.xlu1 %805, %v28_v10   ;;  %v1064_v10 = vrot.slane %v37_v29, %v361_v56 }
  0x20   :  { %808 = vset.pattern.permute.xlu0 %v884_v11  ;;  %1496 = vst [vmem:[#allocation18_spill] sm:$0xff] %v1064_v10 }
  0x21   :  { %188 = vperm.xlu0 %808, %v22_v4  }
  0x22   :  { %806 = vset.pattern.permute.xlu1 %v882_v6 }
  0x23   :  { %116 = vperm.xlu1 %806, %v24_v7  }
  0x25   :  { %811 = vset.pattern.permute.xlu0 %v885_v12 }
  0x26   :  { %224 = vperm.xlu0 %811, %v930_v1  }
  0x27   :  { %807 = vset.pattern.permute.xlu1 %v884_v11 }
  0x28   :  { %184 = vperm.xlu1 %807, %v930_v1  }
  0x2a   :  { %232 = vperm.xlu0 %811, %v925_v0  }
  0x2c   :  { %809 = vset.pattern.permute.xlu1 %v883_v9  ;;  %v1062_v9 = vrot.slane %v782_v33, %v321_v52 }
  0x2d   :  { %156 = vperm.xlu1 %809, %v24_v7  }
  0x2e   :  { %815 = vset.pattern.permute.xlu0 %v886_v13  ;;  %1495 = vst [vmem:[#allocation17_spill] sm:$0xff] %v1062_v9 }
  0x2f   :  { %268 = vperm.xlu0 %815, %v22_v4  }
  0x31   :  { %810 = vset.pattern.permute.xlu1 %v884_v11 }
  0x32   :  { %192 = vperm.xlu1 %810, %v925_v0  }
  0x33   :  { %818 = vset.pattern.permute.xlu0 %v887_v14 }
  0x34   :  { %304 = vperm.xlu0 %818, %v930_v1  }
  0x36   :  { %812 = vset.pattern.permute.xlu1 %v885_v12 }
  0x37   :  { %228 = vperm.xlu1 %812, %v22_v4  }
  0x38   :  { %312 = vperm.xlu0 %818, %v925_v0  }
  0x3b   :  { %813 = vset.pattern.permute.xlu1 %v884_v11 }
  0x3c   :  { %196 = vperm.xlu1 %813, %v24_v7   ;;  %822 = vset.pattern.permute.xlu0 %v888_v15 }
  0x3d   :  { %348 = vperm.xlu0 %822, %v22_v4  }
  0x40   :  { %814 = vset.pattern.permute.xlu1 %v886_v13 }
  0x41   :  { %264 = vperm.xlu1 %814, %v930_v1   ;;  %356 = vperm.xlu0 %822, %v24_v7  }
  0x45   :  { %816 = vset.pattern.permute.xlu1 %v885_v12 }
  0x46   :  { %236 = vperm.xlu1 %816, %v24_v7  }
  0x4a   :  { %817 = vset.pattern.permute.xlu1 %v886_v13 }
  0x4b   :  { %272 = vperm.xlu1 %817, %v925_v0  }
  0x4f   :  { %819 = vset.pattern.permute.xlu1 %v887_v14 }
  0x50   :  { %308 = vperm.xlu1 %819, %v22_v4   ;;  %v1054_v4 = vrot.slane %v37_v29, %v321_v52  ;;  %v1082_v29 = vrot.slane %v782_v33, %v361_v56 }
  0x52   :  { %1492 = vst [vmem:[#allocation14_spill] sm:$0xff] %v1054_v4  ;;  %1499 = vst [vmem:[#allocation21_spill] sm:$0xff] %v1082_v29 }
  0x54   :  { %820 = vset.pattern.permute.xlu1 %v886_v13 }
  0x55   :  { %276 = vperm.xlu1 %820, %v24_v7  }
  0x59   :  { %821 = vset.pattern.permute.xlu1 %v888_v15 }
  0x5a   :  { %344 = vperm.xlu1 %821, %v930_v1   ;;  %v1048_v1 = vrot.slane %v781_v31, %v281_v48 }
  0x5c   :  { %1490 = vst [vmem:[#allocation12_spill] sm:$0xff] %v1048_v1 }
  0x5e   :  { %823 = vset.pattern.permute.xlu1 %v887_v14  ;;  %v1072_v14 = vrot.slane %v38_v30, %v361_v56 }
  0x5f   :  { %316 = vperm.xlu1 %823, %v24_v7  }
  0x60   :  { %1497 = vst [vmem:[#allocation19_spill] sm:$0xff] %v1072_v14 }
  0x63   :  { %824 = vset.pattern.permute.xlu1 %v888_v15 }
  0x64   :  { %352 = vperm.xlu1 %824, %v925_v0   ;;  %v1046_v0 = vrot.slane %v38_v30, %v281_v48 }
  0x66   :  { %1489 = vst [vmem:[#allocation11_spill] sm:$0xff] %v1046_v0 }
  0x81   :  { %v966_v16 = vpop.permute.xlu1 %51  ;;  %v970_v18 = vpop.permute.xlu0 %41 }
  0x82   :  { %v67_v2 = vmul.f32 %v998_v35, %v970_v18  ;;  %v68_v6 = vmul.f32 %v1000_v36, %v970_v18  ;;  %v486_v11 = vmul.f32 %v1002_v37, %v970_v18  ;;  %v71_v15 = vmul.f32 %v998_v35, %v966_v16 }
  0x83   :  { %v72_v32 = vmul.f32 %v1000_v36, %v966_v16  ;;  %v487_v34 = vmul.f32 %v1006_v40, %v970_v18  ;;  %v491_v10 = vmul.f32 %v1006_v40, %v966_v16 }
  0x85   :  { %v968_v17 = vpop.permute.xlu1 %77  ;;  %v974_v20 = vpop.permute.xlu0 %46 }
  0x86   :  { %v69_v12 = vmul.f32 %v998_v35, %v974_v20  ;;  %v70_v13 = vmul.f32 %v1000_v36, %v974_v20  ;;  %v488_v22 = vmul.f32 %v1002_v37, %v974_v20  ;;  %v95_v30 = vadd.f32 %v968_v17, %v67_v2 }
  0x87   :  { %v489_v39 = vmul.f32 %v1006_v40, %v974_v20  ;;  %v96_v43 = vadd.f32 %v968_v17, %v68_v6  ;;  %v494_v52 = vadd.f32 %v486_v11, %v968_v17  ;;  %v490_v11 = vmul.f32 %v1002_v37, %v966_v16 }
  0x89   :  { %v978_v23 = vpop.permute.xlu0 %82 }
  0x8a   :  { %v972_v19 = vpop.permute.xlu1 %104  ;;  %v97_v56 = vadd.f32 %v978_v23, %v69_v12  ;;  %v98_v20 = vadd.f32 %v978_v23, %v70_v13  ;;  %v496_v2 = vadd.f32 %v488_v22, %v978_v23  ;;  %v497_v12 = vadd.f32 %v489_v39, %v978_v23 }
  0x8b   :  { %v127_v48 = vmul.f32 %v1008_v41, %v972_v19  ;;  %v128_v31 = vmul.f32 %v1010_v42, %v972_v19  ;;  %v510_v33 = vmul.f32 %v1012_v44, %v972_v19  ;;  %v511_v18 = vmul.f32 %v1014_v45, %v972_v19 }
  0x8c   :  { %v495_v19 = vadd.f32 %v487_v34, %v968_v17 }
  0x8d   :  { %v135_v9 = vadd.f32 %v127_v48, %v95_v30  ;;  %v136_v8 = vadd.f32 %v128_v31, %v96_v43  ;;  %v518_v5 = vadd.f32 %v510_v33, %v494_v52 }
  0x8e   :  { %v984_v28 = vpop.permute.xlu0 %108  ;;  %v519_v4 = vadd.f32 %v511_v18, %v495_v19 }
  0x8f   :  { %v976_v21 = vpop.permute.xlu1 %56  ;;  %v129_v6 = vmul.f32 %v1008_v41, %v984_v28  ;;  %v130_v29 = vmul.f32 %v1010_v42, %v984_v28  ;;  %v512_v27 = vmul.f32 %v1012_v44, %v984_v28  ;;  %v513_v13 = vmul.f32 %v1014_v45, %v984_v28 }
  0x90   :  { %v73_v3 = vmul.f32 %v998_v35, %v976_v21  ;;  %v74_v17 = vmul.f32 %v1000_v36, %v976_v21  ;;  %v492_v23 = vmul.f32 %v1002_v37, %v976_v21  ;;  %v493_v28 = vmul.f32 %v1006_v40, %v976_v21 }
  0x91   :  { %v137_v34 = vadd.f32 %v129_v6, %v97_v56  ;;  %v138_v39 = vadd.f32 %v130_v29, %v98_v20  ;;  %v520_v1 = vadd.f32 %v512_v27, %v496_v2  ;;  %v521_v30 = vadd.f32 %v513_v13, %v497_v12 }
  0x92   :  { %v1016_v46 = vpop.permute.xlu0 %112 }
  0x93   :  { %v980_v24 = vpop.permute.xlu1 %87  ;;  %v131_v43 = vmul.f32 %v1008_v41, %v1016_v46  ;;  %v132_v35 = vmul.f32 %v1010_v42, %v1016_v46  ;;  %v514_v36 = vmul.f32 %v1012_v44, %v1016_v46  ;;  %v515_v40 = vmul.f32 %v1014_v45, %v1016_v46 }
  0x94   :  { %v99_v48 = vadd.f32 %v980_v24, %v71_v15  ;;  %v100_v37 = vadd.f32 %v980_v24, %v72_v32  ;;  %v498_v21 = vadd.f32 %v490_v11, %v980_v24  ;;  %v499_v29 = vadd.f32 %v491_v10, %v980_v24 }
  0x96   :  { %v139_v2 = vadd.f32 %v131_v43, %v99_v48  ;;  %v522_v6 = vadd.f32 %v514_v36, %v498_v21  ;;  %v523_v12 = vadd.f32 %v515_v40, %v499_v29 }
  0x97   :  { %v149_v7 = vpop.permute.xlu0 %148 }
  0x98   :  { %v982_v26 = vpop.permute.xlu1 %144  ;;  %v169_v31 = vmul.f32 %v1018_v47, %v149_v7  ;;  %v170_v33 = vmul.f32 %v1020_v49, %v149_v7  ;;  %v536_v52 = vmul.f32 %v1022_v50, %v149_v7  ;;  %v537_v18 = vmul.f32 %v1024_v51, %v149_v7 }
  0x99   :  { %v167_v15 = vmul.f32 %v1018_v47, %v982_v26  ;;  %v168_v32 = vmul.f32 %v1020_v49, %v982_v26  ;;  %v534_v46 = vmul.f32 %v1022_v50, %v982_v26  ;;  %v535_v24 = vmul.f32 %v1024_v51, %v982_v26 }
  0x9a   :  { %v140_v7 = vadd.f32 %v132_v35, %v100_v37  ;;  %v177_v13 = vadd.f32 %v169_v31, %v137_v34  ;;  %v178_v0 = vadd.f32 %v170_v33, %v138_v39  ;;  %v544_v63 = vadd.f32 %v536_v52, %v520_v1  ;;  %v1502_v52 = vld [vmem:[#allocation8_spill] sm:$0xff] }
  0x9b   :  { %v153_v14 = vpop.permute.xlu0 %152  ;;  %v175_v26 = vadd.f32 %v167_v15, %v135_v9  ;;  %v176_v62 = vadd.f32 %v168_v32, %v136_v8  ;;  %v543_v61 = vadd.f32 %v535_v24, %v519_v4 }
  0x9c   :  { %v171_v10 = vmul.f32 %v1018_v47, %v153_v14  ;;  %v172_v56 = vmul.f32 %v1020_v49, %v153_v14  ;;  %v538_v20 = vmul.f32 %v1022_v50, %v153_v14  ;;  %v539_v11 = vmul.f32 %v1024_v51, %v153_v14 }
  0x9d   :  { %v1004_v38 = vpop.permute.xlu1 %92  ;;  %v542_v47 = vadd.f32 %v534_v46, %v518_v5 }
  0x9e   :  { %v1160_v49 = vadd.f32 %v171_v10, %v139_v2  ;;  %v1162_v50 = vadd.f32 %v172_v56, %v140_v7  ;;  %v1164_v43 = vadd.f32 %v538_v20, %v522_v6  ;;  %v1166_v35 = vadd.f32 %v539_v11, %v523_v12  ;;  %v1505_v20 = vld [vmem:[#allocation5_spill] sm:$0xff]  ;;  %v1506_v6 = vld [vmem:[#allocation6_spill] sm:$0xff]  ;;  %v1507_v12 = vld [vmem:[#allocation7_spill] sm:$0xff] }
  0x9f   :  { %v102_v36 = vadd.f32 %v1004_v38, %v74_v17  ;;  %v500_v48 = vadd.f32 %v492_v23, %v1004_v38 }
  0xa0   :  { %v189_v16 = vpop.permute.xlu0 %188 }
  0xa1   :  { %v209_v14 = vmul.f32 %v1026_v53, %v189_v16  ;;  %v210_v34 = vmul.f32 %v1028_v54, %v189_v16  ;;  %v560_v1 = vmul.f32 %v1030_v55, %v189_v16  ;;  %v561_v9 = vmul.f32 %v1034_v58, %v189_v16 }
  0xa2   :  { %v1032_v57 = vpop.permute.xlu1 %116 }
  0xa3   :  { %v133_v8 = vmul.f32 %v1008_v41, %v1032_v57  ;;  %v134_v4 = vmul.f32 %v1010_v42, %v1032_v57  ;;  %v516_v5 = vmul.f32 %v1012_v44, %v1032_v57  ;;  %v517_v37 = vmul.f32 %v1014_v45, %v1032_v57 }
  0xa4   :  { %v501_v41 = vadd.f32 %v493_v28, %v1004_v38  ;;  %v217_v16 = vadd.f32 %v209_v14, %v177_v13  ;;  %v218_v17 = vadd.f32 %v210_v34, %v178_v0  ;;  %v568_v40 = vadd.f32 %v560_v1, %v544_v63  ;;  %v1503_v0 = vld [vmem:[#allocation9_spill] sm:$0xff] }
  0xa5   :  { %v225_v19 = vpop.permute.xlu0 %224  ;;  %v142_v57 = vadd.f32 %v134_v4, %v102_v36  ;;  %v524_v29 = vadd.f32 %v516_v5, %v500_v48 }
  0xa6   :  { %v247_v28 = vmul.f32 %v1036_v59, %v225_v19  ;;  %v248_v33 = vmul.f32 %v1038_v60, %v225_v19  ;;  %v583_v63 = vmul.f32 %v1503_v0, %v225_v19 }
  0xa7   :  { %v1078_v25 = vpop.permute.xlu1 %184 }
  0xa8   :  { %v207_v42 = vmul.f32 %v1026_v53, %v1078_v25  ;;  %v208_v44 = vmul.f32 %v1028_v54, %v1078_v25  ;;  %v559_v23 = vmul.f32 %v1034_v58, %v1078_v25 }
  0xa9   :  { %v233_v39 = vpop.permute.xlu0 %232 }
  0xaa   :  { %v215_v32 = vadd.f32 %v207_v42, %v175_v26  ;;  %v216_v46 = vadd.f32 %v208_v44, %v176_v62  ;;  %v252_v7 = vmul.f32 %v1038_v60, %v233_v39  ;;  %v587_v62 = vmul.f32 %v1503_v0, %v233_v39 }
  0xac   :  { %v1116_v22 = vpop.permute.xlu1 %156  ;;  %v1220_v4 = vadd.f32 %v248_v33, %v216_v46 }
  0xad   :  { %1500 = vst [vmem:[#allocation22_spill] sm:$0xff] %v1116_v22  ;;  %v545_v22 = vadd.f32 %v537_v18, %v521_v30  ;;  %v101_v30 = vadd.f32 %v1004_v38, %v73_v3  ;;  %v558_v3 = vmul.f32 %v1030_v55, %v1078_v25  ;;  %v525_v38 = vadd.f32 %v517_v37, %v501_v41 }
  0xae   :  { %v582_v18 = vmul.f32 %v1502_v52, %v225_v19  ;;  %v269_v15 = vpop.permute.xlu0 %268  ;;  %v567_v25 = vadd.f32 %v559_v23, %v543_v61 }
  0xaf   :  { %v141_v45 = vadd.f32 %v133_v8, %v101_v30  ;;  %v569_v31 = vadd.f32 %v561_v9, %v545_v22  ;;  %v566_v24 = vadd.f32 %v558_v3, %v542_v47  ;;  %v251_v22 = vmul.f32 %v1036_v59, %v233_v39 }
  0xb0   :  { %v586_v47 = vmul.f32 %v1502_v52, %v233_v39  ;;  %v1218_v8 = vadd.f32 %v247_v28, %v215_v32  ;;  %v1509_v32 = vld [vmem:[#allocation10_spill] sm:$0xff] }
  0xb1   :  { %v1139_v27 = vpop.permute.xlu1 %192  ;;  %v1222_v5 = vadd.f32 %v582_v18, %v566_v24  ;;  %v1511_v24 = vld [vmem:[#allocation12_spill] sm:$0xff] }
  0xb2   :  { %1501 = vst [vmem:[#allocation23_spill] sm:$0xff] %v1139_v27 }
  0xb3   :  { %v305_v1 = vpop.permute.xlu0 %304 }
  0xb4   :  { %v1504_v56 = vld [vmem:[#allocation22_spill] sm:$0xff] }
  0xb5   :  { %v173_v2 = vmul.f32 %v1505_v20, %v1504_v56  ;;  %v174_v11 = vmul.f32 %v1506_v6, %v1504_v56  ;;  %v540_v13 = vmul.f32 %v1507_v12, %v1504_v56  ;;  %v541_v61 = vmul.f32 %v1024_v51, %v1504_v56  ;;  %v1513_v20 = vld [vmem:[#allocation14_spill] sm:$0xff] }
  0xb6   :  { %v1158_v27 = vpop.permute.xlu1 %228  ;;  %v1226_v51 = vadd.f32 %v583_v63, %v567_v25  ;;  %v608_v63 = vmul.f32 %v1511_v24, %v269_v15 }
  0xb7   :  { %v181_v9 = vadd.f32 %v173_v2, %v141_v45  ;;  %v249_v30 = vmul.f32 %v1036_v59, %v1158_v27  ;;  %v250_v36 = vmul.f32 %v1038_v60, %v1158_v27  ;;  %v182_v37 = vadd.f32 %v174_v11, %v142_v57  ;;  %v313_v33 = vpop.permute.xlu0 %312 }
  0xb8   :  { %v548_v41 = vadd.f32 %v540_v13, %v524_v29  ;;  %v584_v42 = vmul.f32 %v1502_v52, %v1158_v27  ;;  %v585_v44 = vmul.f32 %v1503_v0, %v1158_v27  ;;  %v1238_v3 = vadd.f32 %v541_v61, %v525_v38  ;;  %v1510_v29 = vld [vmem:[#allocation11_spill] sm:$0xff]  ;;  %v1512_v27 = vld [vmem:[#allocation13_spill] sm:$0xff] }
  0xb9   :  { %v1508_v19 = vld [vmem:[#allocation23_spill] sm:$0xff]  ;;  %v289_v57 = vmul.f32 %v1509_v32, %v269_v15  ;;  %v290_v46 = vmul.f32 %v1510_v29, %v269_v15  ;;  %v257_v25 = vadd.f32 %v249_v30, %v217_v16  ;;  %v258_v56 = vadd.f32 %v250_v36, %v218_v17 }
  0xba   :  { %v211_v26 = vmul.f32 %v1026_v53, %v1508_v19  ;;  %v212_v14 = vmul.f32 %v1028_v54, %v1508_v19  ;;  %v562_v34 = vmul.f32 %v1030_v55, %v1508_v19  ;;  %v563_v39 = vmul.f32 %v1034_v58, %v1508_v19 }
  0xbb   :  { %v1183_v21 = vpop.permute.xlu1 %196  ;;  %v609_v38 = vmul.f32 %v1512_v27, %v269_v15  ;;  %v327_v2 = vmul.f32 %v1513_v20, %v305_v1  ;;  %v593_v6 = vadd.f32 %v585_v44, %v569_v31  ;;  %v1261_v15 = vmul.f32 %v1513_v20, %v313_v33 }
  0xbc   :  { %v219_v23 = vadd.f32 %v211_v26, %v1160_v49  ;;  %v220_v45 = vadd.f32 %v212_v14, %v1162_v50  ;;  %v570_v28 = vadd.f32 %v562_v34, %v1164_v43  ;;  %v571_v18 = vadd.f32 %v563_v39, %v1166_v35  ;;  %v1514_v50 = vld [vmem:[#allocation15_spill] sm:$0xff]  ;;  %v1515_v43 = vld [vmem:[#allocation16_spill] sm:$0xff]  ;;  %v1516_v26 = vld [vmem:[#allocation17_spill] sm:$0xff] }
  0xbd   :  { %v592_v49 = vadd.f32 %v584_v42, %v568_v40  ;;  %v328_v11 = vmul.f32 %v1514_v50, %v305_v1  ;;  %v630_v12 = vmul.f32 %v1515_v43, %v305_v1  ;;  %v631_v16 = vmul.f32 %v1516_v26, %v305_v1  ;;  %1517 = vst [vmem:[#allocation8_spill] sm:$0xff] %v1261_v15 }
  0xbe   :  { %v1251_v35 = vadd.f32 %v251_v22, %v219_v23  ;;  %v1253_v61 = vadd.f32 %v252_v7, %v220_v45  ;;  %v1255_v19 = vadd.f32 %v586_v47, %v570_v28  ;;  %v1258_v17 = vadd.f32 %v587_v62, %v571_v18  ;;  %v349_v47 = vpop.permute.xlu0 %348 }
  0xbf   :  { %v1264_v40 = vmul.f32 %v1514_v50, %v313_v33  ;;  %v1267_v31 = vmul.f32 %v1515_v43, %v313_v33  ;;  %v213_v22 = vmul.f32 %v1026_v53, %v1183_v21  ;;  %v1272_v7 = vmul.f32 %v1516_v26, %v313_v33  ;;  %v1521_v33 = vld [vmem:[#allocation18_spill] sm:$0xff] }
  0xc0   :  { %v1198_v10 = vpop.permute.xlu1 %264  ;;  %v297_v14 = vadd.f32 %v289_v57, %v257_v25  ;;  %v298_v34 = vadd.f32 %v290_v46, %v258_v56  ;;  %v616_v39 = vadd.f32 %v608_v63, %v592_v49  ;;  %v617_v30 = vadd.f32 %v609_v38, %v593_v6  ;;  %v1522_v57 = vld [vmem:[#allocation19_spill] sm:$0xff]  ;;  %v1524_v56 = vld [vmem:[#allocation21_spill] sm:$0xff] }
  0xc1   :  { %1518 = vst [vmem:[#allocation9_spill] sm:$0xff] %v1264_v40  ;;  %1519 = vst [vmem:[#allocation22_spill] sm:$0xff] %v1267_v31  ;;  %v287_v62 = vmul.f32 %v1509_v32, %v1198_v10  ;;  %v288_v1 = vmul.f32 %v1510_v29, %v1198_v10  ;;  %v214_v36 = vmul.f32 %v1028_v54, %v1183_v21 }
  0xc2   :  { %1520 = vst [vmem:[#allocation5_spill] sm:$0xff] %v1272_v7  ;;  %v564_v53 = vmul.f32 %v1030_v55, %v1183_v21  ;;  %v606_v42 = vmul.f32 %v1511_v24, %v1198_v10  ;;  %v607_v44 = vmul.f32 %v1512_v27, %v1198_v10  ;;  %v369_v18 = vmul.f32 %v1521_v33, %v349_v47  ;;  %v1523_v55 = vld [vmem:[#allocation20_spill] sm:$0xff] }
  0xc3   :  { %v370_v46 = vmul.f32 %v1522_v57, %v349_v47  ;;  %v221_v63 = vadd.f32 %v213_v22, %v181_v9  ;;  %v565_v54 = vmul.f32 %v1034_v58, %v1183_v21  ;;  %v656_v25 = vmul.f32 %v1523_v55, %v349_v47 }
  0xc4   :  { %v657_v38 = vmul.f32 %v1524_v56, %v349_v47  ;;  %v295_v10 = vadd.f32 %v287_v62, %v1218_v8  ;;  %v296_v40 = vadd.f32 %v288_v1, %v1220_v4  ;;  %v222_v15 = vadd.f32 %v214_v36, %v182_v37 }
  0xc5   :  { %v1232_v48 = vpop.permute.xlu1 %236  ;;  %v572_v7 = vadd.f32 %v564_v53, %v548_v41  ;;  %v614_v31 = vadd.f32 %v606_v42, %v1222_v5 }
  0xc6   :  { %v253_v9 = vmul.f32 %v1036_v59, %v1232_v48  ;;  %v254_v58 = vmul.f32 %v1038_v60, %v1232_v48  ;;  %v588_v8 = vmul.f32 %v1502_v52, %v1232_v48  ;;  %v589_v4 = vmul.f32 %v1503_v0, %v1232_v48 }
  0xc7   :  { %v573_v59 = vadd.f32 %v565_v54, %v1238_v3  ;;  %v335_v37 = vadd.f32 %v327_v2, %v295_v10  ;;  %v336_v41 = vadd.f32 %v328_v11, %v296_v40  ;;  %v638_v1 = vadd.f32 %v630_v12, %v614_v31 }
  0xc8   :  { %v261_v0 = vadd.f32 %v253_v9, %v221_v63  ;;  %v262_v48 = vadd.f32 %v254_v58, %v222_v15  ;;  %v596_v53 = vadd.f32 %v588_v8, %v572_v7 }
  0xc9   :  { %v597_v3 = vadd.f32 %v589_v4, %v573_v59  ;;  %v1527_v8 = vld [vmem:[#allocation5_spill] sm:$0xff]  ;;  %v1528_v4 = vld [vmem:[#allocation8_spill] sm:$0xff] }
  0xca   :  { %v273_v13 = vpop.permute.xlu1 %272 }
  0xcb   :  { %v610_v52 = vmul.f32 %v1511_v24, %v273_v13  ;;  %v611_v62 = vmul.f32 %v1512_v27, %v273_v13 }
  0xcd   :  { %v619_v15 = vadd.f32 %v611_v62, %v1258_v17 }
  0xcf   :  { %v309_v23 = vpop.permute.xlu1 %308 }
  0xd0   :  { %v329_v45 = vmul.f32 %v1513_v20, %v309_v23  ;;  %v330_v28 = vmul.f32 %v1514_v50, %v309_v23  ;;  %v615_v50 = vadd.f32 %v607_v44, %v1226_v51  ;;  %v632_v5 = vmul.f32 %v1515_v43, %v309_v23 }
  0xd1   :  { %v633_v51 = vmul.f32 %v1516_v26, %v309_v23 }
  0xd2   :  { %v337_v49 = vadd.f32 %v329_v45, %v297_v14  ;;  %v338_v6 = vadd.f32 %v330_v28, %v298_v34  ;;  %v291_v14 = vmul.f32 %v1509_v32, %v273_v13  ;;  %v292_v34 = vmul.f32 %v1510_v29, %v273_v13 }
  0xd3   :  { %v639_v36 = vadd.f32 %v631_v16, %v615_v50  ;;  %v640_v44 = vadd.f32 %v632_v5, %v616_v39  ;;  %v641_v23 = vadd.f32 %v633_v51, %v617_v30  ;;  %v618_v13 = vadd.f32 %v610_v52, %v1255_v19  ;;  %v1529_v51 = vld [vmem:[#allocation9_spill] sm:$0xff] }
  0xd4   :  { %v277_v21 = vpop.permute.xlu1 %276  ;;  %v1302_v22 = vadd.f32 %v369_v18, %v337_v49  ;;  %v1304_v47 = vadd.f32 %v370_v46, %v338_v6  ;;  %v299_v12 = vadd.f32 %v291_v14, %v1251_v35  ;;  %v300_v50 = vadd.f32 %v292_v34, %v1253_v61 }
  0xd5   :  { %v293_v30 = vmul.f32 %v1509_v32, %v277_v21  ;;  %v294_v28 = vmul.f32 %v1510_v29, %v277_v21  ;;  %v612_v19 = vmul.f32 %v1511_v24, %v277_v21  ;;  %v613_v17 = vmul.f32 %v1512_v27, %v277_v21  ;;  %v1525_v32 = vld [vmem:[#allocation15_spill] sm:$0xff]  ;;  %v1526_v27 = vld [vmem:[#allocation22_spill] sm:$0xff] }
  0xd6   :  { %v386_v60 = vadd.f32 %v1304_v47, %v1302_v22  ;;  %v1343_v46 = vadd.f32 %v656_v25, %v640_v44  ;;  %v1345_v63 = vadd.f32 %v657_v38, %v641_v23  ;;  %v642_v6 = vadd.f32 %v1526_v27, %v618_v13  ;;  %v357_v25 = vpop.permute.xlu0 %356 }
  0xd7   :  { %v620_v10 = vadd.f32 %v612_v19, %v596_v53  ;;  %v621_v9 = vadd.f32 %v613_v17, %v597_v3  ;;  %v301_v58 = vadd.f32 %v293_v30, %v261_v0  ;;  %v302_v21 = vadd.f32 %v294_v28, %v262_v48  ;;  %v29_v19 = vld [vmem:[%s1460_s3] sm:$0xff] }
  0xd8   :  { %387 = vadd.xlane.f32.xlu0 %v386_v60  ;;  %v673_v38 = vadd.f32 %v1345_v63, %v1343_v46  ;;  %v339_v5 = vadd.f32 %v1528_v4, %v299_v12  ;;  %v660_v0 = vmul.f32 %v1523_v55, %v357_v25  ;;  %v661_v48 = vmul.f32 %v1524_v56, %v357_v25 }
  0xd9   :  { %v345_v42 = vpop.permute.xlu1 %344 }
  0xda   :  { %v367_v2 = vmul.f32 %v1521_v33, %v345_v42  ;;  %v368_v11 = vmul.f32 %v1522_v57, %v345_v42  ;;  %v654_v40 = vmul.f32 %v1523_v55, %v345_v42  ;;  %v655_v45 = vmul.f32 %v1524_v56, %v345_v42 }
  0xdc   :  { %v1327_v16 = vadd.f32 %v367_v2, %v335_v37  ;;  %v1329_v31 = vadd.f32 %v368_v11, %v336_v41  ;;  %v1331_v7 = vadd.f32 %v654_v40, %v638_v1  ;;  %v1333_v39 = vadd.f32 %v655_v45, %v639_v36 }
  0xdd   :  { %v373_v1 = vmul.f32 %v1521_v33, %v357_v25  ;;  %v374_v36 = vmul.f32 %v1522_v57, %v357_v25 }
  0xde   :  { %v317_v18 = vpop.permute.xlu1 %316  ;;  %v383_v35 = vadd.f32 %v1329_v31, %v1327_v16  ;;  %v670_v61 = vadd.f32 %v1333_v39, %v1331_v7 }
  0xdf   :  { %v333_v54 = vmul.f32 %v1513_v20, %v317_v18  ;;  %v334_v49 = vmul.f32 %v1525_v32, %v317_v18  ;;  %v636_v29 = vmul.f32 %v1515_v43, %v317_v18  ;;  %v637_v24 = vmul.f32 %v1516_v26, %v317_v18  ;;  %v30_v18 = vld [vmem:[%s1460_s3 + $0x8] sm:$0xff] }
  0xe0   :  { %384 = vadd.xlane.f32.xlu1 %v383_v35  ;;  %671 = vadd.xlane.f32.xlu0 %v670_v61  ;;  %v643_v20 = vadd.f32 %v1527_v8, %v619_v15  ;;  %v340_v43 = vadd.f32 %v1529_v51, %v300_v50  ;;  %v32_v8 = vld [vmem:[%s1460_s3 + $0x18] sm:$0xff] }
  0xe1   :  { %v644_v26 = vadd.f32 %v636_v29, %v620_v10  ;;  %v645_v60 = vadd.f32 %v637_v24, %v621_v9  ;;  %v341_v37 = vadd.f32 %v333_v54, %v301_v58  ;;  %v342_v41 = vadd.f32 %v334_v49, %v302_v21  ;;  %v31_v49 = vld [vmem:[%s1460_s3 + $0x10] sm:$0xff] }
  0xe3   :  { %v353_v59 = vpop.permute.xlu1 %352  ;;  %v1373_v23 = vadd.f32 %v660_v0, %v644_v26  ;;  %v1375_v2 = vadd.f32 %v661_v48, %v645_v60 }
  0xe4   :  { %674 = vadd.xlane.f32.xlu1 %v673_v38  ;;  %v658_v14 = vmul.f32 %v1523_v55, %v353_v59  ;;  %v659_v34 = vmul.f32 %v1524_v56, %v353_v59  ;;  %v371_v52 = vmul.f32 %v1521_v33, %v353_v59  ;;  %v372_v62 = vmul.f32 %v1522_v57, %v353_v59 }
  0xe5   :  { %v1381_v56 = vadd.f32 %v373_v1, %v341_v37  ;;  %v1383_v57 = vadd.f32 %v374_v36, %v342_v41  ;;  %v679_v11 = vadd.f32 %v1375_v2, %v1373_v23 }
  0xe6   :  { %v1365_v53 = vadd.f32 %v658_v14, %v642_v6  ;;  %v1367_v3 = vadd.f32 %v659_v34, %v643_v20  ;;  %v1369_v42 = vadd.f32 %v371_v52, %v339_v5  ;;  %v1371_v44 = vadd.f32 %v372_v62, %v340_v43 }
  0xe7   :  { %v392_v40 = vadd.f32 %v1383_v57, %v1381_v56 }
  0xe8   :  { %v676_v55 = vadd.f32 %v1367_v3, %v1365_v53  ;;  %v389_v33 = vadd.f32 %v1371_v44, %v1369_v42 }
  0xea   :  { %677 = vadd.xlane.f32.xlu1 %v676_v55  ;;  %390 = vadd.xlane.f32.xlu0 %v389_v33 }
  0xee   :  { %680 = vadd.xlane.f32.xlu1 %v679_v11  ;;  %393 = vadd.xlane.f32.xlu0 %v392_v40 }
 0x165   :  { %v388_v45 = vpop.xlane.xlu0 %387 }
 0x166   :  { %v397_v28 = vmul.f32 0.00390625, %v388_v45 }
 0x168   :  { %v401_v54 = vmul.f32 %v397_v28, %v30_v18  ;;  %v33_v28 = vld [vmem:[%s1461_s4] sm:$0xff] }
 0x16a   :  { %v406_v25 = vsel %vm404_vm0, %v401_v54, 0.0 }
 0x16d   :  { %v385_v13 = vpop.xlane.xlu1 %384  ;;  %v672_v15 = vpop.xlane.xlu0 %671 }
 0x16e   :  { %v396_v50 = vmul.f32 0.00390625, %v385_v13  ;;  %v682_v17 = vmul.f32 0.00390625, %v672_v15 }
 0x170   :  { %v400_v35 = vmul.f32 %v396_v50, %v29_v19  ;;  %v686_v32 = vmul.f32 %v682_v17, %v29_v19 }
 0x171   :  { %v675_v12 = vpop.xlane.xlu1 %674 }
 0x172   :  { %v683_v30 = vmul.f32 0.00390625, %v675_v12  ;;  %v405_v10 = vsel %vm404_vm0, %v400_v35, 0.0  ;;  %v690_v38 = vsel %vm404_vm0, %v686_v32, 0.0  ;;  %v35_v35 = vld [vmem:[%s1461_s4 + $0x10] sm:$0xff] }
 0x173   :  { %v407_v26 = vadd.f32 %v406_v25, %v405_v10 }
 0x174   :  { %v687_v61 = vmul.f32 %v683_v30, %v30_v18  ;;  %v34_v30 = vld [vmem:[%s1461_s4 + $0x8] sm:$0xff]  ;;  %v36_v18 = vld [vmem:[%s1461_s4 + $0x18] sm:$0xff]  ;;  %s889_s4 = smov [#allocation2]  }
 0x175   :  { %s766_s29 = sshll.u32 %s889_s4, 4  ;;  %s767_s29 = int_to_ptr.vmem [resolvable:$true] %s766_s29 }
 0x176   :  { %v691_v9 = vsel %vm404_vm0, %v687_v61, 0.0  ;;  %s857_s30 = scalar_lea.vmem %s767_s29, 2048  ;;  %p862_p1 = scmp.lt.s32.totalorder %s767_s29, %s767_s29 }
 0x177   :  { %v678_v29 = vpop.xlane.xlu1 %677  ;;  %v391_v24 = vpop.xlane.xlu0 %390  ;;  %v692_v60 = vadd.f32 %v691_v9, %v690_v38  ;;  %p858_p0 = scmp.ne.s32.totalorder %s767_s29, %s857_s30  ;;  %p863_p2 = scmp.lt.s32.totalorder %s857_s30, %s857_s30 }
 0x178   :  { %v684_v27 = vmul.f32 0.00390625, %v678_v29  ;;  %v398_v6 = vmul.f32 0.00390625, %v391_v24 }
 0x179   :  { %p864_p3 = por %p863_p2, %p862_p1 }
 0x17a   :  { %v688_v58 = vmul.f32 %v684_v27, %v31_v49  ;;  %v402_v21 = vmul.f32 %v398_v6, %v31_v49 }
 0x17b   :  { %v681_v20 = vpop.xlane.xlu1 %680  ;;  %v394_v4 = vpop.xlane.xlu0 %393  ;;  %p865_p4 = pnand %p864_p3, %p858_p0 }
 0x17c   :  { %v693_v5 = vsel %vm404_vm0, %v688_v58, 0.0  ;;  %v408_v51 = vsel %vm404_vm0, %v402_v21, 0.0  ;;  %v685_v43 = vmul.f32 0.00390625, %v681_v20  ;;  %v399_v59 = vmul.f32 0.00390625, %v394_v4 }
 0x17d   :  { %v694_v14 = vadd.f32 %v693_v5, %v692_v60  ;;  %v409_v34 = vadd.f32 %v408_v51, %v407_v26 }
 0x17e   :  { %v689_v37 = vmul.f32 %v685_v43, %v32_v8  ;;  %v403_v41 = vmul.f32 %v399_v59, %v32_v8 }
 0x180   :  { %v695_v52 = vsel %vm404_vm0, %v689_v37, 0.0  ;;  %v410_v62 = vsel %vm404_vm0, %v403_v41, 0.0 }
 0x181   :  { %v696_v0 = vadd.f32 %v695_v52, %v694_v14  ;;  %v411_v48 = vadd.f32 %v410_v62, %v409_v34 }
 0x183   :  { %v697_v1 = vrot.slane %v696_v0, 4  ;;  %v412_v36 = vrot.slane %v411_v48, 4 }
 0x185   :  { %v698_v55 = vadd.f32 %v697_v1, %v696_v0  ;;  %v413_v33 = vadd.f32 %v412_v36, %v411_v48 }
 0x187   :  { %v699_v11 = vrot.slane %v698_v55, 2  ;;  %v414_v40 = vrot.slane %v413_v33, 2 }
 0x189   :  { %v700_v45 = vadd.f32 %v699_v11, %v698_v55  ;;  %v415_v13 = vadd.f32 %v414_v40, %v413_v33 }
 0x18b   :  { %v701_v15 = vrot.slane %v700_v45, 1  ;;  %v416_v12 = vrot.slane %v415_v13, 1 }
 0x18d   :  { %v417_v50 = vadd.f32 %v416_v12, %v415_v13  ;;  %v702_v19 = vadd.f32 %v701_v15, %v700_v45 }
 0x18f   :  { %v418_v17 = vmax.f32 %v417_v50, 0.0  ;;  %v703_v32 = vmax.f32 %v702_v19, 0.0 }
 0x191   :  { %v420_v61 = vmul.f32 %v418_v17, %v34_v30  ;;  %v419_v54 = vmul.f32 %v418_v17, %v33_v28  ;;  %v422_v24 = vmul.f32 %v418_v17, %v36_v18  ;;  %v421_v27 = vmul.f32 %v418_v17, %v35_v35 }
 0x192   :  { %v705_v9 = vmul.f32 %v703_v32, %v34_v30  ;;  %v704_v58 = vmul.f32 %v703_v32, %v33_v28  ;;  %v707_v38 = vmul.f32 %v703_v32, %v36_v18  ;;  %v706_v8 = vmul.f32 %v703_v32, %v35_v35 }
 0x193   :  { %v426_v49 = vsel %vm404_vm0, %v420_v61, 0.0  ;;  %v423_v29 = vsel %vm404_vm0, %v419_v54, 0.0  ;;  %v432_v6 = vsel %vm404_vm0, %v422_v24, 0.0  ;;  %v429_v10 = vsel %vm404_vm0, %v421_v27, 0.0 }
 0x194   :  { %427 = vadd.xlane.f32.xlu1 %v426_v49  ;;  %424 = vadd.xlane.f32.xlu0 %v423_v29  ;;  %v711_v21 = vsel %vm404_vm0, %v705_v9, 0.0  ;;  %v708_v25 = vsel %vm404_vm0, %v704_v58, 0.0  ;;  %v717_v20 = vsel %vm404_vm0, %v707_v38, 0.0  ;;  %v714_v4 = vsel %vm404_vm0, %v706_v8, 0.0 }
 0x198   :  { %433 = vadd.xlane.f32.xlu1 %v432_v6  ;;  %430 = vadd.xlane.f32.xlu0 %v429_v10 }
 0x19c   :  { %712 = vadd.xlane.f32.xlu1 %v711_v21  ;;  %709 = vadd.xlane.f32.xlu0 %v708_v25 }
 0x1a0   :  { %718 = vadd.xlane.f32.xlu1 %v717_v20  ;;  %715 = vadd.xlane.f32.xlu0 %v714_v4 }
 0x221   :  { %v428_v5 = vpop.xlane.xlu1 %427  ;;  %v425_v51 = vpop.xlane.xlu0 %424 }
 0x222   :  { %v778_v43 = vmul.f32 -1.442695, %v428_v5  ;;  %v777_v59 = vmul.f32 -1.442695, %v425_v51 }
 0x224   :  { %825 = vpow2.f32 %v778_v43 }
 0x225   :  { %827 = vpow2.f32 %v777_v59  ;;  %v434_v26 = vpop.xlane.xlu1 %433  ;;  %v431_v60 = vpop.xlane.xlu0 %430 }
 0x226   :  { %v780_v37 = vmul.f32 -1.442695, %v434_v26  ;;  %v779_v41 = vmul.f32 -1.442695, %v431_v60 }
 0x228   :  { %829 = vpow2.f32 %v780_v37 }
 0x229   :  { %831 = vpow2.f32 %v779_v41  ;;  %v713_v14 = vpop.xlane.xlu1 %712  ;;  %v710_v34 = vpop.xlane.xlu0 %709 }
 0x22a   :  { %v784_v52 = vmul.f32 -1.442695, %v713_v14  ;;  %v783_v62 = vmul.f32 -1.442695, %v710_v34 }
 0x22c   :  { %833 = vpow2.f32 %v784_v52 }
 0x22d   :  { %835 = vpow2.f32 %v783_v62  ;;  %v719_v0 = vpop.xlane.xlu1 %718  ;;  %v716_v48 = vpop.xlane.xlu0 %715 }
 0x22e   :  { %v826_v1 = vpop.eup %825  ;;  %v786_v36 = vmul.f32 -1.442695, %v719_v0  ;;  %v785_v11 = vmul.f32 -1.442695, %v716_v48 }
 0x22f   :  { %v828_v55 = vpop.eup %827  ;;  %v448_v33 = vadd.f32 1.0, %v826_v1 }
 0x230   :  { %v447_v40 = vadd.f32 1.0, %v828_v55  ;;  %837 = vpow2.f32 %v786_v36 }
 0x231   :  { %839 = vrcp.f32 %v448_v33 }
 0x232   :  { %v830_v45 = vpop.eup %829  ;;  %841 = vrcp.f32 %v447_v40 }
 0x233   :  { %v832_v13 = vpop.eup %831  ;;  %v450_v15 = vadd.f32 1.0, %v830_v45  ;;  %843 = vpow2.f32 %v785_v11 }
 0x234   :  { %v449_v12 = vadd.f32 1.0, %v832_v13 }
 0x235   :  { %845 = vrcp.f32 %v450_v15 }
 0x236   :  { %v834_v50 = vpop.eup %833  ;;  %847 = vrcp.f32 %v449_v12 }
 0x237   :  { %v836_v30 = vpop.eup %835  ;;  %v733_v28 = vadd.f32 1.0, %v834_v50 }
 0x238   :  { %v732_v19 = vadd.f32 1.0, %v836_v30 }
 0x239   :  { %849 = vrcp.f32 %v733_v28 }
 0x23a   :  { %v838_v17 = vpop.eup %837  ;;  %851 = vrcp.f32 %v732_v19 }
 0x23b   :  { %v840_v18 = vpop.eup %839  ;;  %v735_v35 = vadd.f32 1.0, %v838_v17 }
 0x23c   :  { %v842_v61 = vpop.eup %841  ;;  %v461_v54 = vmul.f32 %v840_v18, %v1302_v22  ;;  %v462_v32 = vmul.f32 %v840_v18, %v1304_v47 }
 0x23d   :  { %v844_v49 = vpop.eup %843  ;;  %v459_v29 = vmul.f32 %v842_v61, %v1327_v16  ;;  %v460_v24 = vmul.f32 %v842_v61, %v1329_v31  ;;  %853 = vrcp.f32 %v735_v35 }
 0x23e   :  { %469 = vst [vmem:[#allocation2 + $0x10] sm:$0xff] %v461_v54  ;;  %470 = vst [vmem:[#allocation2 + $0x18] sm:$0xff] %v462_v32  ;;  %v734_v27 = vadd.f32 1.0, %v844_v49 }
 0x23f   :  { %v846_v6 = vpop.eup %845  ;;  %467 = vst [vmem:[#allocation2] sm:$0xff] %v459_v29  ;;  %468 = vst [vmem:[#allocation2 + $0x8] sm:$0xff] %v460_v24 }
 0x240   :  { %v848_v10 = vpop.eup %847  ;;  %v465_v9 = vmul.f32 %v846_v6, %v1381_v56  ;;  %v466_v58 = vmul.f32 %v846_v6, %v1383_v57  ;;  %855 = vrcp.f32 %v734_v27 }
 0x241   :  { %v463_v22 = vmul.f32 %v848_v10, %v1369_v42  ;;  %v464_v47 = vmul.f32 %v848_v10, %v1371_v44 }
 0x242   :  { %473 = vst [vmem:[#allocation2 + $0x30] sm:$0xff] %v465_v9  ;;  %474 = vst [vmem:[#allocation2 + $0x38] sm:$0xff] %v466_v58 }
 0x243   :  { %v850_v16 = vpop.eup %849  ;;  %471 = vst [vmem:[#allocation2 + $0x20] sm:$0xff] %v463_v22  ;;  %472 = vst [vmem:[#allocation2 + $0x28] sm:$0xff] %v464_v47 }
 0x244   :  { %v852_v31 = vpop.eup %851  ;;  %v746_v21 = vmul.f32 %v850_v16, %v1343_v46  ;;  %v747_v25 = vmul.f32 %v850_v16, %v1345_v63 }
 0x245   :  { %v744_v38 = vmul.f32 %v852_v31, %v1331_v7  ;;  %v745_v56 = vmul.f32 %v852_v31, %v1333_v39 }
 0x246   :  { %755 = vst [vmem:[#allocation2 + $0x50] sm:$0xff] %v746_v21  ;;  %756 = vst [vmem:[#allocation2 + $0x58] sm:$0xff] %v747_v25 }
 0x247   :  { %v854_v57 = vpop.eup %853  ;;  %753 = vst [vmem:[#allocation2 + $0x40] sm:$0xff] %v744_v38  ;;  %754 = vst [vmem:[#allocation2 + $0x48] sm:$0xff] %v745_v56 }
 0x248   :  { %v750_v42 = vmul.f32 %v854_v57, %v1373_v23  ;;  %v751_v44 = vmul.f32 %v854_v57, %v1375_v2 }
 0x24a   :  { %v856_v8 = vpop.eup %855  ;;  %759 = vst [vmem:[#allocation2 + $0x70] sm:$0xff] %v750_v42  ;;  %760 = vst [vmem:[#allocation2 + $0x78] sm:$0xff] %v751_v44 }
 0x24b   :  { %v748_v46 = vmul.f32 %v856_v8, %v1365_v53  ;;  %v749_v7 = vmul.f32 %v856_v8, %v1367_v3 }
 0x24d   :  { %757 = vst [vmem:[#allocation2 + $0x60] sm:$0xff] %v748_v46  ;;  %758 = vst [vmem:[#allocation2 + $0x68] sm:$0xff] %v749_v7 }
 0x24e   :  { %868 = shalt.err (!%p865_p4)
}
 0x24f   :  { %s869_s8 = scalar_lea.hbm %s1462_s5, 2048 }
 0x250   :  { %p870_p5 = scmp.ne.s32.totalorder %s1462_s5, %s869_s8  ;;  %p873_p6 = scmp.lt.u32.totalorder %s869_s8, %s1462_s5 }
 0x252   :  { %p875_p7 = pnand %p873_p6, %p870_p5 }
 0x254   :  { %878 = shalt.err (!%p875_p7)
}
 0x255   :  { %s890_s11 = smov 256   ;;  %s891_s12 = smov 16  }
 0x256   :  { %772 = dma.vmem_to_hbm [thread:$0]  %s767_s29, 2048, %s1462_s5, [#allocation3], %s890_s11, %s890_s11, %s891_s12  }
 0x257   :  { %879 = dma.done.wait [#allocation3], 2048  }
 0x258   :  { %880 = vsyncadd [#allocation3], 4294965248 }
 0x259   :  { %776 = vsyncpa [#allocation3], 1 }

</bundles_post_ra>
